<compile_context>
chip_gen: v6e
topology: v6e:2x2x1
jax: 0.10.0
libtpu: 0.0.40
codegen_flags: <defaults>
</compile_context>

<pallas_src>
import functools

import jax
import jax.numpy as jnp
from jax.experimental import pallas as pl
from jax.experimental.pallas import tpu as pltpu

_LANE = 128
_SUBLANE = 8


def _round_up(n: int, m: int) -> int:
    return ((n + m - 1) // m) * m


def _apply_activation(y, activation: str):
    # y is f32; keep elementwise math f32 (safe on v5e, fine on v6e/v7x).
    if activation == "relu":
        return jnp.maximum(y, 0.0)
    if activation == "tanh":
        return jnp.tanh(y)
    if activation == "sigmoid":
        return jax.nn.sigmoid(y)
    if activation == "softrelu":  # GluonTS name for softplus
        return jax.nn.softplus(y)
    if activation == "elu":
        return jax.nn.elu(y)
    raise ValueError(f"Unsupported activation: {activation!r}")


def _mlp_fused_kernel(*refs, num_layers: int, activation: str):
    """o = actL(...act0(x @ W0 + b0)...) on one (TB, Din_p) batch tile.

    refs = (x_ref, w_0..w_{L-1}, b_0..b_{L-1}, o_ref)
      x_ref: (TB, Din_p)  w_l: (Din_p_l, Dout_p_l)  b_l: (1, Dout_p_l)
      o_ref: (TB, Dout_p_last)
    Whole layer stack runs in-register; intermediates never touch HBM.
    """
    x_ref = refs[0]
    w_refs = refs[1:1 + num_layers]
    b_refs = refs[1 + num_layers:1 + 2 * num_layers]
    o_ref = refs[1 + 2 * num_layers]

    h = x_ref[...].astype(jnp.float32)
    for layer in range(num_layers):  # small, static -> unrolled
        # bf16 operands feed the MXU at full rate; accumulate in f32.
        y = jnp.dot(h.astype(jnp.bfloat16), w_refs[layer][...],
                    preferred_element_type=jnp.float32)
        y = y + b_refs[layer][...]            # (1, Dout_p) broadcasts over rows
        h = _apply_activation(y, activation)
    o_ref[...] = h.astype(o_ref.dtype)


def init_mlp_params(key, input_size: int, layer_sizes, dtype=jnp.float32):
    """nn.Linear-style init (uniform +-1/sqrt(fan_in)); weights stored [in, out]."""
    params = []
    in_dim = input_size
    for out_dim in layer_sizes:
        key, kw, kb = jax.random.split(key, 3)
        bound = 1.0 / float(in_dim) ** 0.5
        w = jax.random.uniform(kw, (in_dim, out_dim), dtype, -bound, bound)
        b = jax.random.uniform(kb, (out_dim,), dtype, -bound, bound)
        params.append((w, b))
        in_dim = out_dim
    return params


def pack_mlp_params(params):
    """Per-layer zero-pad to lane-dense (rup(din,128), rup(dout,128)).

    Weights -> bfloat16 (MXU operands), biases -> f32 (added to f32 accumulator).
    Zero-padded weight ROWS guarantee padded lanes (act(0) != 0 for sigmoid etc.)
    never contaminate real output columns of the next layer.
    Returns (w_list, b_list, last_out_dim).
    """
    w_list, b_list = [], []
    for w, b in params:
        din, dout = w.shape
        din_p = _round_up(din, _LANE)
        dout_p = _round_up(dout, _LANE)
        w_list.append(
            jnp.pad(w.astype(jnp.float32), ((0, din_p - din), (0, dout_p - dout)))
            .astype(jnp.bfloat16))
        b_list.append(
            jnp.pad(b.astype(jnp.float32).reshape(1, -1), ((0, 0), (0, dout_p - dout))))
    return w_list, b_list, params[-1][0].shape[1]


def mlp_forward(x: jax.Array, packed_params, activation: str = "relu"):
    """Forward pass of the MLP block. Accepts arbitrary leading dims (like nn.Linear)."""
    w_list, b_list, last_out = packed_params
    num_layers = len(w_list)
    d_in_p = w_list[0].shape[0]
    d_out_p = w_list[-1].shape[1]

    lead_shape = x.shape[:-1]
    d_in = x.shape[-1]
    x2 = x.reshape(-1, d_in)
    batch = x2.shape[0]

    # Batch tile: fill the 256-wide MXU on v6e/v7x when rows allow; small
    # batches just round up to a sublane multiple.
    if batch >= 512:
        tb = 512
    elif batch >= 256:
        tb = 256
    elif batch >= 128:
        tb = 128
    else:
        tb = _round_up(batch, _SUBLANE)
    b_pad = _round_up(batch, tb)

    x_p = jnp.pad(x2, ((0, b_pad - batch), (0, d_in_p - d_in)))

    kernel = functools.partial(
        _mlp_fused_kernel, num_layers=num_layers, activation=activation)

    # VMEM budget: single-buffered weights/biases + double-buffered in/out
    # tiles + per-layer intermediates, with headroom; clamp to v7x's 64 MiB/TC.
    weight_bytes = sum(int(w.size) * w.dtype.itemsize for w in w_list)
    bias_bytes = sum(int(b.size) * b.dtype.itemsize for b in b_list)
    act_bytes = 4 * tb * (2 * d_in_p + 2 * d_out_p + sum(w.shape[1] for w in w_list))
    vmem_limit = min(
        64 << 20,
        max(int(1.5 * (weight_bytes + bias_bytes + act_bytes)) + (4 << 20), 16 << 20))

    flops = 2 * b_pad * sum(w.shape[0] * w.shape[1] for w in w_list)
    transcendentals = 0 if activation == "relu" else b_pad * sum(w.shape[1] for w in w_list)
    bytes_accessed = (int(x_p.size) * x_p.dtype.itemsize + weight_bytes + bias_bytes
                      + b_pad * d_out_p * jnp.dtype(x.dtype).itemsize)
    cost = pl.CostEstimate(flops=flops, transcendentals=transcendentals,
                           bytes_accessed=bytes_accessed)

    def _build(single_buffer_weights: bool):
        # Weight/bias index_maps are batch-independent -> blocks DMA'd once and
        # stay resident; single-buffering halves their VMEM footprint.
        resident = ({"pipeline_mode": pl.Buffered(1)}
                    if single_buffer_weights else {})
        in_specs = [pl.BlockSpec((tb, d_in_p), lambda i: (i, 0))]
        for w in w_list:
            in_specs.append(pl.BlockSpec(w.shape, lambda i: (0, 0), **resident))
        for b in b_list:
            in_specs.append(pl.BlockSpec(b.shape, lambda i: (0, 0), **resident))
        return pl.pallas_call(
            kernel,
            out_shape=jax.ShapeDtypeStruct((b_pad, d_out_p), x.dtype),
            grid=(b_pad // tb,),
            in_specs=in_specs,
            out_specs=pl.BlockSpec((tb, d_out_p), lambda i: (i, 0)),
            compiler_params=pltpu.CompilerParams(
                dimension_semantics=("parallel",),
                vmem_limit_bytes=vmem_limit,
            ),
            cost_estimate=cost,
        )

    try:
        out_p = _build(True)(x_p, *w_list, *b_list)
    except Exception:  # jax builds without Buffered(1) support: fall back.
        out_p = _build(False)(x_p, *w_list, *b_list)

    out = out_p[:batch, :last_out]
    return out.reshape(*lead_shape, last_out)


if __name__ == "__main__":
    key = jax.random.PRNGKey(0)
    key, kx = jax.random.split(key)

    batch = 8
    input_size = 32
    layer_sizes = [64, 32, 16]

    x = jax.random.normal(kx, (batch, input_size), jnp.float32)
    params = init_mlp_params(key, input_size, layer_sizes)
    packed = pack_mlp_params(params)

    out = mlp_forward(x, packed, activation="relu")
    out = jax.block_until_ready(out)

    # Pure-JAX f32 reference (activation after every Linear, like the module).
    ref = x
    for w, b in params:
        ref = jnp.maximum(ref @ w + b.reshape(1, -1), 0.0)

    assert out.shape == (batch, layer_sizes[-1])
    # bf16 matmul operands with f32 accumulation -> loosened tolerance vs. f32 ref.
    assert jnp.allclose(out, ref, atol=3e-2, rtol=3e-2), float(jnp.max(jnp.abs(out - ref)))

    print("KERNEL_OK")
</pallas_src>

<mosaic_0001>
module attributes {stable_mosaic.version = 11 : i64} {
  func.func @_mlp_fused_kernel(%arg0: i32, %arg1: memref<8x128xf32, #tpu.memory_space<vmem>>, %arg2: memref<128x128xbf16, #tpu.memory_space<vmem>>, %arg3: memref<128x128xbf16, #tpu.memory_space<vmem>>, %arg4: memref<128x128xbf16, #tpu.memory_space<vmem>>, %arg5: memref<1x128xf32, #tpu.memory_space<vmem>>, %arg6: memref<1x128xf32, #tpu.memory_space<vmem>>, %arg7: memref<1x128xf32, #tpu.memory_space<vmem>>, %arg8: memref<8x128xf32, #tpu.memory_space<vmem>>) attributes {dimension_semantics = [#tpu.dimension_semantics<parallel>], iteration_bounds = array<i64: 1>, scalar_prefetch = 0 : i64, scratch_operands = 0 : i64, tpu.core_type = #tpu.core_type<tc>, window_params = [{transform_indices = @transform_0, window_bounds = array<i64: 8, 128>}, {pipeline_mode = #tpu.pipeline_mode<synchronous>, transform_indices = @transform_1, window_bounds = array<i64: 128, 128>}, {pipeline_mode = #tpu.pipeline_mode<synchronous>, transform_indices = @transform_2, window_bounds = array<i64: 128, 128>}, {pipeline_mode = #tpu.pipeline_mode<synchronous>, transform_indices = @transform_3, window_bounds = array<i64: 128, 128>}, {pipeline_mode = #tpu.pipeline_mode<synchronous>, transform_indices = @transform_4, window_bounds = array<i64: 1, 128>}, {pipeline_mode = #tpu.pipeline_mode<synchronous>, transform_indices = @transform_5, window_bounds = array<i64: 1, 128>}, {pipeline_mode = #tpu.pipeline_mode<synchronous>, transform_indices = @transform_6, window_bounds = array<i64: 1, 128>}, {transform_indices = @transform_7, window_bounds = array<i64: 8, 128>}]} {
    %c0 = arith.constant 0 : index
    %c0_0 = arith.constant 0 : index
    %0 = vector.load %arg1[%c0, %c0_0] : memref<8x128xf32, #tpu.memory_space<vmem>>, vector<8x128xf32>
    %1 = arith.truncf %0 : vector<8x128xf32> to vector<8x128xbf16>
    %c0_1 = arith.constant 0 : index
    %c0_2 = arith.constant 0 : index
    %2 = vector.load %arg2[%c0_1, %c0_2] : memref<128x128xbf16, #tpu.memory_space<vmem>>, vector<128x128xbf16>
    %cst = arith.constant dense<0.000000e+00> : vector<8x128xf32>
    %3 = tpu.matmul %1, %2, %cst {dimension_numbers = #tpu.dot_dimension_numbers<[1], [0], [0], [1], [0, 0, 1, 1], [], []>} : vector<8x128xbf16>, vector<128x128xbf16>, vector<8x128xf32> -> vector<8x128xf32>
    %c0_3 = arith.constant 0 : index
    %c0_4 = arith.constant 0 : index
    %4 = vector.load %arg5[%c0_3, %c0_4] : memref<1x128xf32, #tpu.memory_space<vmem>>, vector<1x128xf32>
    %5 = vector.broadcast %4 : vector<1x128xf32> to vector<8x128xf32>
    %6 = arith.addf %3, %5 : vector<8x128xf32>
    %cst_5 = arith.constant 0.000000e+00 : f32
    %7 = vector.broadcast %cst_5 : f32 to vector<8x128xf32>
    %8 = arith.maximumf %6, %7 : vector<8x128xf32>
    %9 = arith.truncf %8 : vector<8x128xf32> to vector<8x128xbf16>
    %c0_6 = arith.constant 0 : index
    %c0_7 = arith.constant 0 : index
    %10 = vector.load %arg3[%c0_6, %c0_7] : memref<128x128xbf16, #tpu.memory_space<vmem>>, vector<128x128xbf16>
    %cst_8 = arith.constant dense<0.000000e+00> : vector<8x128xf32>
    %11 = tpu.matmul %9, %10, %cst_8 {dimension_numbers = #tpu.dot_dimension_numbers<[1], [0], [0], [1], [0, 0, 1, 1], [], []>} : vector<8x128xbf16>, vector<128x128xbf16>, vector<8x128xf32> -> vector<8x128xf32>
    %c0_9 = arith.constant 0 : index
    %c0_10 = arith.constant 0 : index
    %12 = vector.load %arg6[%c0_9, %c0_10] : memref<1x128xf32, #tpu.memory_space<vmem>>, vector<1x128xf32>
    %13 = vector.broadcast %12 : vector<1x128xf32> to vector<8x128xf32>
    %14 = arith.addf %11, %13 : vector<8x128xf32>
    %cst_11 = arith.constant 0.000000e+00 : f32
    %15 = vector.broadcast %cst_11 : f32 to vector<8x128xf32>
    %16 = arith.maximumf %14, %15 : vector<8x128xf32>
    %17 = arith.truncf %16 : vector<8x128xf32> to vector<8x128xbf16>
    %c0_12 = arith.constant 0 : index
    %c0_13 = arith.constant 0 : index
    %18 = vector.load %arg4[%c0_12, %c0_13] : memref<128x128xbf16, #tpu.memory_space<vmem>>, vector<128x128xbf16>
    %cst_14 = arith.constant dense<0.000000e+00> : vector<8x128xf32>
    %19 = tpu.matmul %17, %18, %cst_14 {dimension_numbers = #tpu.dot_dimension_numbers<[1], [0], [0], [1], [0, 0, 1, 1], [], []>} : vector<8x128xbf16>, vector<128x128xbf16>, vector<8x128xf32> -> vector<8x128xf32>
    %c0_15 = arith.constant 0 : index
    %c0_16 = arith.constant 0 : index
    %20 = vector.load %arg7[%c0_15, %c0_16] : memref<1x128xf32, #tpu.memory_space<vmem>>, vector<1x128xf32>
    %21 = vector.broadcast %20 : vector<1x128xf32> to vector<8x128xf32>
    %22 = arith.addf %19, %21 : vector<8x128xf32>
    %cst_17 = arith.constant 0.000000e+00 : f32
    %23 = vector.broadcast %cst_17 : f32 to vector<8x128xf32>
    %24 = arith.maximumf %22, %23 : vector<8x128xf32>
    %c0_18 = arith.constant 0 : index
    %c0_19 = arith.constant 0 : index
    %25 = vector.load %arg8[%c0_18, %c0_19] : memref<8x128xf32, #tpu.memory_space<vmem>>, vector<8x128xf32>
    tpu.vector_store %arg8[%c0_18, %c0_19], %24 {strides = array<i32>} : memref<8x128xf32, #tpu.memory_space<vmem>>, vector<8x128xf32>,
    return
  }
  func.func @transform_0(%arg0: i32) -> (i32, i32) {
    %c0_i32 = arith.constant 0 : i32
    %c0_i32_0 = arith.constant 0 : i32
    return %arg0, %c0_i32 : i32, i32
  }
  func.func @transform_1(%arg0: i32) -> (i32, i32) {
    %c0_i32 = arith.constant 0 : i32
    %c0_i32_0 = arith.constant 0 : i32
    %c0_i32_1 = arith.constant 0 : i32
    return %c0_i32, %c0_i32_0 : i32, i32
  }
  func.func @transform_2(%arg0: i32) -> (i32, i32) {
    %c0_i32 = arith.constant 0 : i32
    %c0_i32_0 = arith.constant 0 : i32
    %c0_i32_1 = arith.constant 0 : i32
    return %c0_i32, %c0_i32_0 : i32, i32
  }
  func.func @transform_3(%arg0: i32) -> (i32, i32) {
    %c0_i32 = arith.constant 0 : i32
    %c0_i32_0 = arith.constant 0 : i32
    %c0_i32_1 = arith.constant 0 : i32
    return %c0_i32, %c0_i32_0 : i32, i32
  }
  func.func @transform_4(%arg0: i32) -> (i32, i32) {
    %c0_i32 = arith.constant 0 : i32
    %c0_i32_0 = arith.constant 0 : i32
    %c0_i32_1 = arith.constant 0 : i32
    return %c0_i32, %c0_i32_0 : i32, i32
  }
  func.func @transform_5(%arg0: i32) -> (i32, i32) {
    %c0_i32 = arith.constant 0 : i32
    %c0_i32_0 = arith.constant 0 : i32
    %c0_i32_1 = arith.constant 0 : i32
    return %c0_i32, %c0_i32_0 : i32, i32
  }
  func.func @transform_6(%arg0: i32) -> (i32, i32) {
    %c0_i32 = arith.constant 0 : i32
    %c0_i32_0 = arith.constant 0 : i32
    %c0_i32_1 = arith.constant 0 : i32
    return %c0_i32, %c0_i32_0 : i32, i32
  }
  func.func @transform_7(%arg0: i32) -> (i32, i32) {
    %c0_i32 = arith.constant 0 : i32
    %c0_i32_0 = arith.constant 0 : i32
    return %arg0, %c0_i32 : i32, i32
  }
}

module attributes {stable_mosaic.version = 11 : i64} {
  func.func @_mlp_fused_kernel(%arg0: i32, %arg1: memref<8x128xf32, #tpu.memory_space<vmem>>, %arg2: memref<128x128xbf16, #tpu.memory_space<vmem>>, %arg3: memref<128x128xbf16, #tpu.memory_space<vmem>>, %arg4: memref<128x128xbf16, #tpu.memory_space<vmem>>, %arg5: memref<1x128xf32, #tpu.memory_space<vmem>>, %arg6: memref<1x128xf32, #tpu.memory_space<vmem>>, %arg7: memref<1x128xf32, #tpu.memory_space<vmem>>, %arg8: memref<8x128xf32, #tpu.memory_space<vmem>>) attributes {dimension_semantics = [#tpu.dimension_semantics<parallel>], iteration_bounds = array<i64: 1>, scalar_prefetch = 0 : i64, scratch_operands = 0 : i64, tpu.core_type = #tpu.core_type<tc>, window_params = [{transform_indices = @transform_0, window_bounds = array<i64: 8, 128>}, {pipeline_mode = #tpu.pipeline_mode<synchronous>, transform_indices = @transform_1, window_bounds = array<i64: 128, 128>}, {pipeline_mode = #tpu.pipeline_mode<synchronous>, transform_indices = @transform_2, window_bounds = array<i64: 128, 128>}, {pipeline_mode = #tpu.pipeline_mode<synchronous>, transform_indices = @transform_3, window_bounds = array<i64: 128, 128>}, {pipeline_mode = #tpu.pipeline_mode<synchronous>, transform_indices = @transform_4, window_bounds = array<i64: 1, 128>}, {pipeline_mode = #tpu.pipeline_mode<synchronous>, transform_indices = @transform_5, window_bounds = array<i64: 1, 128>}, {pipeline_mode = #tpu.pipeline_mode<synchronous>, transform_indices = @transform_6, window_bounds = array<i64: 1, 128>}, {transform_indices = @transform_7, window_bounds = array<i64: 8, 128>}]} {
    %c0 = arith.constant 0 : index
    %c0_0 = arith.constant 0 : index
    %0 = vector.load %arg1[%c0, %c0_0] : memref<8x128xf32, #tpu.memory_space<vmem>>, vector<8x128xf32>
    %1 = arith.truncf %0 : vector<8x128xf32> to vector<8x128xbf16>
    %c0_1 = arith.constant 0 : index
    %c0_2 = arith.constant 0 : index
    %2 = vector.load %arg2[%c0_1, %c0_2] : memref<128x128xbf16, #tpu.memory_space<vmem>>, vector<128x128xbf16>
    %cst = arith.constant dense<0.000000e+00> : vector<8x128xf32>
    %3 = tpu.matmul %1, %2, %cst {dimension_numbers = #tpu.dot_dimension_numbers<[1], [0], [0], [1], [0, 0, 1, 1], [], []>} : vector<8x128xbf16>, vector<128x128xbf16>, vector<8x128xf32> -> vector<8x128xf32>
    %c0_3 = arith.constant 0 : index
    %c0_4 = arith.constant 0 : index
    %4 = vector.load %arg5[%c0_3, %c0_4] : memref<1x128xf32, #tpu.memory_space<vmem>>, vector<1x128xf32>
    %5 = vector.broadcast %4 : vector<1x128xf32> to vector<8x128xf32>
    %6 = arith.addf %3, %5 : vector<8x128xf32>
    %cst_5 = arith.constant 0.000000e+00 : f32
    %7 = vector.broadcast %cst_5 : f32 to vector<8x128xf32>
    %8 = arith.maximumf %6, %7 : vector<8x128xf32>
    %9 = arith.truncf %8 : vector<8x128xf32> to vector<8x128xbf16>
    %c0_6 = arith.constant 0 : index
    %c0_7 = arith.constant 0 : index
    %10 = vector.load %arg3[%c0_6, %c0_7] : memref<128x128xbf16, #tpu.memory_space<vmem>>, vector<128x128xbf16>
    %cst_8 = arith.constant dense<0.000000e+00> : vector<8x128xf32>
    %11 = tpu.matmul %9, %10, %cst_8 {dimension_numbers = #tpu.dot_dimension_numbers<[1], [0], [0], [1], [0, 0, 1, 1], [], []>} : vector<8x128xbf16>, vector<128x128xbf16>, vector<8x128xf32> -> vector<8x128xf32>
    %c0_9 = arith.constant 0 : index
    %c0_10 = arith.constant 0 : index
    %12 = vector.load %arg6[%c0_9, %c0_10] : memref<1x128xf32, #tpu.memory_space<vmem>>, vector<1x128xf32>
    %13 = vector.broadcast %12 : vector<1x128xf32> to vector<8x128xf32>
    %14 = arith.addf %11, %13 : vector<8x128xf32>
    %cst_11 = arith.constant 0.000000e+00 : f32
    %15 = vector.broadcast %cst_11 : f32 to vector<8x128xf32>
    %16 = arith.maximumf %14, %15 : vector<8x128xf32>
    %17 = arith.truncf %16 : vector<8x128xf32> to vector<8x128xbf16>
    %c0_12 = arith.constant 0 : index
    %c0_13 = arith.constant 0 : index
    %18 = vector.load %arg4[%c0_12, %c0_13] : memref<128x128xbf16, #tpu.memory_space<vmem>>, vector<128x128xbf16>
    %cst_14 = arith.constant dense<0.000000e+00> : vector<8x128xf32>
    %19 = tpu.matmul %17, %18, %cst_14 {dimension_numbers = #tpu.dot_dimension_numbers<[1], [0], [0], [1], [0, 0, 1, 1], [], []>} : vector<8x128xbf16>, vector<128x128xbf16>, vector<8x128xf32> -> vector<8x128xf32>
    %c0_15 = arith.constant 0 : index
    %c0_16 = arith.constant 0 : index
    %20 = vector.load %arg7[%c0_15, %c0_16] : memref<1x128xf32, #tpu.memory_space<vmem>>, vector<1x128xf32>
    %21 = vector.broadcast %20 : vector<1x128xf32> to vector<8x128xf32>
    %22 = arith.addf %19, %21 : vector<8x128xf32>
    %cst_17 = arith.constant 0.000000e+00 : f32
    %23 = vector.broadcast %cst_17 : f32 to vector<8x128xf32>
    %24 = arith.maximumf %22, %23 : vector<8x128xf32>
    %c0_18 = arith.constant 0 : index
    %c0_19 = arith.constant 0 : index
    %25 = vector.load %arg8[%c0_18, %c0_19] : memref<8x128xf32, #tpu.memory_space<vmem>>, vector<8x128xf32>
    tpu.vector_store %arg8[%c0_18, %c0_19], %24 {strides = array<i32>} : memref<8x128xf32, #tpu.memory_space<vmem>>, vector<8x128xf32>,
    return
  }
  func.func @transform_0(%arg0: i32) -> (i32, i32) {
    %c0_i32 = arith.constant 0 : i32
    %c0_i32_0 = arith.constant 0 : i32
    return %arg0, %c0_i32 : i32, i32
  }
  func.func @transform_1(%arg0: i32) -> (i32, i32) {
    %c0_i32 = arith.constant 0 : i32
    %c0_i32_0 = arith.constant 0 : i32
    %c0_i32_1 = arith.constant 0 : i32
    return %c0_i32, %c0_i32_0 : i32, i32
  }
  func.func @transform_2(%arg0: i32) -> (i32, i32) {
    %c0_i32 = arith.constant 0 : i32
    %c0_i32_0 = arith.constant 0 : i32
    %c0_i32_1 = arith.constant 0 : i32
    return %c0_i32, %c0_i32_0 : i32, i32
  }
  func.func @transform_3(%arg0: i32) -> (i32, i32) {
    %c0_i32 = arith.constant 0 : i32
    %c0_i32_0 = arith.constant 0 : i32
    %c0_i32_1 = arith.constant 0 : i32
    return %c0_i32, %c0_i32_0 : i32, i32
  }
  func.func @transform_4(%arg0: i32) -> (i32, i32) {
    %c0_i32 = arith.constant 0 : i32
    %c0_i32_0 = arith.constant 0 : i32
    %c0_i32_1 = arith.constant 0 : i32
    return %c0_i32, %c0_i32_0 : i32, i32
  }
  func.func @transform_5(%arg0: i32) -> (i32, i32) {
    %c0_i32 = arith.constant 0 : i32
    %c0_i32_0 = arith.constant 0 : i32
    %c0_i32_1 = arith.constant 0 : i32
    return %c0_i32, %c0_i32_0 : i32, i32
  }
  func.func @transform_6(%arg0: i32) -> (i32, i32) {
    %c0_i32 = arith.constant 0 : i32
    %c0_i32_0 = arith.constant 0 : i32
    %c0_i32_1 = arith.constant 0 : i32
    return %c0_i32, %c0_i32_0 : i32, i32
  }
  func.func @transform_7(%arg0: i32) -> (i32, i32) {
    %c0_i32 = arith.constant 0 : i32
    %c0_i32_0 = arith.constant 0 : i32
    return %arg0, %c0_i32 : i32, i32
  }
}

</mosaic_0001>

<bundles_post_ra>
// kernel: tpu_custom_call.1
= control target key start
LH: loop header
LB: loop body
LE: loop exit
PB: predicated region body
PF: predicated region fallthrough
CT: control target
= control target key end

     0   :  { %12 = vsyncpa [#allocation3], 0  ;;  %s806_s0 = inlined_call_operand.hbm [shape: f32[8,128], index: 0, kind: input, shape index: {}]   ;;  %s807_s1 = inlined_call_operand.hbm [shape: bf16[128,128], index: 1, kind: input, shape index: {}]   ;;  %s808_s2 = inlined_call_operand.hbm [shape: bf16[128,128], index: 2, kind: input, shape index: {}]   ;;  %s809_s3 = inlined_call_operand.hbm [shape: bf16[128,128], index: 3, kind: input, shape index: {}]   ;;  %s810_s4 = inlined_call_operand.vmem [shape: f32[1,128], index: 4, kind: input, shape index: {}]   ;;  %s811_s5 = inlined_call_operand.vmem [shape: f32[1,128], index: 5, kind: input, shape index: {}]   ;;  %s812_s6 = inlined_call_operand.vmem [shape: f32[1,128], index: 6, kind: input, shape index: {}]   ;;  %s813_s7 = inlined_call_operand.hbm [shape: f32[8,128], index: 7, kind: output, shape index: {}]  }
   0x1   :  { %13 = vsyncpa [#allocation6], 0 }
   0x2   :  { %14 = vsyncpa [#allocation9], 0 }
   0x3   :  { %15 = vsyncpa [#allocation4], 0  ;;  %s694_s24 = smov [#allocation5]  }
   0x4   :  { %s31_s25 = sshll.u32 %s694_s24, 4  ;;  %s32_s25 = int_to_ptr.vmem [resolvable:$true] %s31_s25 }
   0x5   :  { %s594_s26 = scalar_lea.vmem %s32_s25, 1024  ;;  %p599_p1 = scmp.lt.s32.totalorder %s32_s25, %s32_s25 }
   0x6   :  { %p595_p0 = scmp.ne.s32.totalorder %s32_s25, %s594_s26  ;;  %p600_p2 = scmp.lt.s32.totalorder %s594_s26, %s594_s26 }
   0x8   :  { %p601_p3 = por %p600_p2, %p599_p1 }
   0xa   :  { %p602_p4 = pnand %p601_p3, %p595_p0 }
   0xc   :  { %605 = shalt.err (!%p602_p4)
}
   0xd   :  { %s695_s27 = smov 64   ;;  %s696_s28 = smov 4  }
   0xe   :  { %37 = dma.hbm_to_vmem [thread:$0]  %s807_s1, 1024, %s32_s25, [#allocation6], %s695_s27, %s695_s27, %s696_s28  }
   0xf   :  { %s697_s8 = smov [#allocation2]   ;;  %s698_s10 = smov [#allocation7]  }
  0x10   :  { %s22_s9 = sshll.u32 %s697_s8, 4  ;;  %s43_s11 = sshll.u32 %s698_s10, 4  ;;  %s23_s9 = int_to_ptr.vmem [resolvable:$true] %s22_s9  ;;  %s44_s11 = int_to_ptr.vmem [resolvable:$true] %s43_s11 }
  0x11   :  { %s614_s12 = scalar_lea.vmem %s23_s9, 128  ;;  %p619_p6 = scmp.lt.s32.totalorder %s23_s9, %s23_s9 }
  0x12   :  { %p615_p5 = scmp.ne.s32.totalorder %s23_s9, %s614_s12  ;;  %p620_p7 = scmp.lt.s32.totalorder %s614_s12, %s614_s12 }
  0x14   :  { %p621_p8 = por %p620_p7, %p619_p6 }
  0x16   :  { %p622_p9 = pnand %p621_p8, %p615_p5 }
  0x18   :  { %625 = shalt.err (!%p622_p9)
}
  0x19   :  { %25 = dma.hbm_to_vmem [thread:$0]  %s806_s0, 128, %s23_s9, [#allocation3]  }
  0x1a   :  { %s634_s15 = scalar_lea.vmem %s44_s11, 1024  ;;  %p639_p11 = scmp.lt.s32.totalorder %s44_s11, %s44_s11 }
  0x1b   :  { %p635_p10 = scmp.ne.s32.totalorder %s44_s11, %s634_s15  ;;  %p640_p12 = scmp.lt.s32.totalorder %s634_s15, %s634_s15 }
  0x1d   :  { %p641_p13 = por %p640_p12, %p639_p11 }
  0x1f   :  { %p642_p0 = pnand %p641_p13, %p635_p10 }
  0x21   :  { %645 = shalt.err (!%p642_p0)
}
  0x22   :  { %49 = dma.hbm_to_vmem [thread:$0]  %s808_s2, 1024, %s44_s11, [#allocation6], %s695_s27, %s695_s27, %s696_s28  }
  0x23   :  { %s699_s17 = smov [#allocation8]  }
  0x24   :  { %s55_s18 = sshll.u32 %s699_s17, 4  ;;  %s56_s18 = int_to_ptr.vmem [resolvable:$true] %s55_s18 }
  0x25   :  { %s654_s19 = scalar_lea.vmem %s56_s18, 1024  ;;  %p659_p2 = scmp.lt.s32.totalorder %s56_s18, %s56_s18 }
  0x26   :  { %p655_p1 = scmp.ne.s32.totalorder %s56_s18, %s654_s19  ;;  %p660_p3 = scmp.lt.s32.totalorder %s654_s19, %s654_s19 }
  0x28   :  { %p661_p4 = por %p660_p3, %p659_p2 }
  0x2a   :  { %p662_p5 = pnand %p661_p4, %p655_p1 }
  0x2c   :  { %665 = shalt.err (!%p662_p5)
}
  0x2d   :  { %61 = dma.hbm_to_vmem [thread:$0]  %s809_s3, 1024, %s56_s18, [#allocation9], %s695_s27, %s695_s27, %s696_s28  }
  0x2e   :  { %686 = dma.done.wait [#allocation3], 128  }
  0x2f   :  { %687 = vsyncadd [#allocation3], 4294967168 }
  0x30   :  { %688 = dma.done.wait [#allocation6], 2048  }
  0x31   :  { %689 = vsyncadd [#allocation6], 4294965248 }
  0x32   :  { %690 = dma.done.wait [#allocation9], 1024  }
  0x33   :  { %691 = vsyncadd [#allocation9], 4294966272  ;;  %v700_v0 = vmov 0.0   ;;  %vm701_vm0 = vmmov 0   ;;  %v562_v1 = vld [vmem:[#allocation5 + $0x38] sm:$0xff]   ;;  %v563_v2 = vld [vmem:[#allocation5 + $0x30] sm:$0xff]  }
  0x34   :  { %493 = vmatprep.subr.bf16.mxu0 %v700_v0  ;;  %509 = vmatprep.mubr.msk.bf16.mxu0 %vm701_vm0, %v700_v0  ;;  %v564_v3 = vld [vmem:[#allocation5 + $0x28] sm:$0xff]   ;;  %v570_v4 = vld [vmem:[#allocation7 + $0x38] sm:$0xff]   ;;  %v565_v5 = vld [vmem:[#allocation5 + $0x20] sm:$0xff]   ;;  %s702_s24 = smov [#allocation10]  }
  0x35   :  { %513 = vmatprep.subr.bf16.mxu1 %v700_v0  ;;  %529 = vmatprep.mubr.msk.bf16.mxu1 %vm701_vm0, %v700_v0  ;;  %v571_v6 = vld [vmem:[#allocation7 + $0x30] sm:$0xff]   ;;  %v566_v7 = vld [vmem:[#allocation5 + $0x18] sm:$0xff]   ;;  %v572_v8 = vld [vmem:[#allocation7 + $0x28] sm:$0xff]   ;;  %s428_s25 = sshll.u32 %s702_s24, 4  ;;  %s429_s25 = int_to_ptr.vmem [resolvable:$true] %s428_s25 }
  0x36   :  { %494 = vmatpush3.bf16.msra.mxu0 %v562_v1  ;;  %514 = vmatpush3.bf16.msra.mxu1 %v570_v4  ;;  %v567_v9 = vld [vmem:[#allocation5 + $0x10] sm:$0xff]   ;;  %v573_v10 = vld [vmem:[#allocation7 + $0x20] sm:$0xff]   ;;  %v568_v11 = vld [vmem:[#allocation5 + $0x8] sm:$0xff]   ;;  %p671_p7 = scmp.lt.s32.totalorder %s429_s25, %s429_s25 }
  0x37   :  { %495 = vmatprep.subr.bf16.mxu0 %v700_v0  ;;  %515 = vmatprep.subr.bf16.mxu1 %v700_v0  ;;  %v574_v12 = vld [vmem:[#allocation7 + $0x18] sm:$0xff]   ;;  %v569_v13 = vld [vmem:[#allocation5] sm:$0xff]   ;;  %v575_v15 = vld [vmem:[#allocation7 + $0x10] sm:$0xff]  }
  0x38   :  { %v81_v14 = vld [vmem:[#allocation2] sm:$0xff]  ;;  %v576_v17 = vld [vmem:[#allocation7 + $0x8] sm:$0xff]   ;;  %v577_v18 = vld [vmem:[#allocation7] sm:$0xff]  }
  0x39   :  { %v82_v16 = vpack.c.bf16 %v81_v14, %v81_v14  ;;  %v578_v19 = vld [vmem:[#allocation8 + $0x38] sm:$0xff]   ;;  %v579_v20 = vld [vmem:[#allocation8 + $0x30] sm:$0xff]   ;;  %v580_v21 = vld [vmem:[#allocation8 + $0x28] sm:$0xff]  }
  0x3a   :  { %496 = vmatpush3.bf16.msra.mxu0 %v563_v2  ;;  %516 = vmatpush3.bf16.msra.mxu1 %v571_v6  ;;  %v581_v22 = vld [vmem:[#allocation8 + $0x20] sm:$0xff]   ;;  %v582_v23 = vld [vmem:[#allocation8 + $0x18] sm:$0xff]   ;;  %v583_v24 = vld [vmem:[#allocation8 + $0x10] sm:$0xff]  }
  0x3b   :  { %497 = vmatprep.subr.bf16.mxu0 %v700_v0  ;;  %517 = vmatprep.subr.bf16.mxu1 %v700_v0  ;;  %v439_v25 = vld [vmem:[%s810_s4] ss:$0 sm:$0xff]  ;;  %v584_v33 = vld [vmem:[#allocation8 + $0x8] sm:$0xff]   ;;  %v585_v34 = vld [vmem:[#allocation8] sm:$0xff]  }
  0x3c   :  { %v448_v35 = vld [vmem:[%s811_s5] ss:$0 sm:$0xff]  ;;  %s666_s5 = scalar_lea.vmem %s429_s25, 128 }
  0x3d   :  { %v457_v43 = vld [vmem:[%s812_s6] ss:$0 sm:$0xff]  ;;  %p667_p6 = scmp.ne.s32.totalorder %s429_s25, %s666_s5  ;;  %p672_p8 = scmp.lt.s32.totalorder %s666_s5, %s666_s5 }
  0x3e   :  { %498 = vmatpush3.bf16.msra.mxu0 %v564_v3  ;;  %518 = vmatpush3.bf16.msra.mxu1 %v572_v8 }
  0x3f   :  { %499 = vmatprep.subr.bf16.mxu0 %v700_v0  ;;  %519 = vmatprep.subr.bf16.mxu1 %v700_v0  ;;  %p673_p9 = por %p672_p8, %p671_p7 }
  0x41   :  { %p674_p10 = pnand %p673_p9, %p667_p6 }
  0x42   :  { %500 = vmatpush3.bf16.msra.mxu0 %v565_v5  ;;  %520 = vmatpush3.bf16.msra.mxu1 %v573_v10 }
  0x43   :  { %501 = vmatprep.subr.bf16.mxu0 %v700_v0  ;;  %521 = vmatprep.subr.bf16.mxu1 %v700_v0 }
  0x46   :  { %502 = vmatpush3.bf16.msra.mxu0 %v566_v7  ;;  %522 = vmatpush3.bf16.msra.mxu1 %v574_v12 }
  0x47   :  { %503 = vmatprep.subr.bf16.mxu0 %v700_v0  ;;  %523 = vmatprep.subr.bf16.mxu1 %v700_v0 }
  0x4a   :  { %504 = vmatpush3.bf16.msra.mxu0 %v567_v9  ;;  %524 = vmatpush3.bf16.msra.mxu1 %v575_v15 }
  0x4b   :  { %505 = vmatprep.subr.bf16.mxu0 %v700_v0  ;;  %525 = vmatprep.subr.bf16.mxu1 %v700_v0 }
  0x4e   :  { %506 = vmatpush3.bf16.msra.mxu0 %v568_v11  ;;  %526 = vmatpush3.bf16.msra.mxu1 %v576_v17 }
  0x4f   :  { %507 = vmatprep.subr.bf16.mxu0 %v700_v0  ;;  %527 = vmatprep.subr.bf16.mxu1 %v700_v0 }
  0x52   :  { %508 = vmatpush3.bf16.msra.mxu0 %v569_v13  ;;  %528 = vmatpush3.bf16.msra.mxu1 %v577_v18 }
  0x53   :  { %533 = vmatprep.subr.bf16.mxu0 %v700_v0 }
  0x55   :  { %510 = vmatmul.mubr.bf16.vlgmr.msra.gmra.mxu0 %v82_v16 }
  0x56   :  { %549 = vmatprep.mubr.msk.bf16.mxu0 %vm701_vm0, %v700_v0  ;;  %534 = vmatpush3.bf16.msra.mxu0 %v578_v19 }
  0x57   :  { %535 = vmatprep.subr.bf16.mxu0 %v700_v0 }
  0x5a   :  { %536 = vmatpush3.bf16.msra.mxu0 %v579_v20 }
  0x5b   :  { %537 = vmatprep.subr.bf16.mxu0 %v700_v0 }
  0x5e   :  { %538 = vmatpush3.bf16.msra.mxu0 %v580_v21 }
  0x5f   :  { %539 = vmatprep.subr.bf16.mxu0 %v700_v0 }
  0x62   :  { %540 = vmatpush3.bf16.msra.mxu0 %v581_v22 }
  0x63   :  { %541 = vmatprep.subr.bf16.mxu0 %v700_v0 }
  0x66   :  { %542 = vmatpush3.bf16.msra.mxu0 %v582_v23 }
  0x67   :  { %543 = vmatprep.subr.bf16.mxu0 %v700_v0 }
  0x6a   :  { %544 = vmatpush3.bf16.msra.mxu0 %v583_v24 }
  0x6b   :  { %545 = vmatprep.subr.bf16.mxu0 %v700_v0 }
  0x6e   :  { %546 = vmatpush3.bf16.msra.mxu0 %v584_v33 }
  0x6f   :  { %547 = vmatprep.subr.bf16.mxu0 %v700_v0 }
  0x72   :  { %548 = vmatpush3.bf16.msra.mxu0 %v585_v34 }
 0x115   :  { %v188_v26 = vpop.f32.mrf.mxu0 }
 0x116   :  { %v189_v27 = vadd.f32 %v439_v25, %v188_v26 }
 0x117   :  { %v511_v28 = vpop.f32.mrf.mxu0 }
 0x118   :  { %v194_v29 = vmax.f32 %v189_v27, 0.0 }
 0x119   :  { %v191_v30 = vpop.f32.mrf.mxu0 }
 0x11a   :  { %v195_v31 = vpack.c.bf16 %v194_v29, %v194_v29 }
 0x11b   :  { %v512_v32 = vpop.f32.mrf.mxu0 }
 0x11c   :  { %530 = vmatmul.mubr.bf16.vlgmr.msra.gmra.mxu1 %v195_v31 }
 0x1dc   :  { %v301_v36 = vpop.f32.mrf.mxu1 }
 0x1dd   :  { %v302_v37 = vadd.f32 %v448_v35, %v301_v36 }
 0x1de   :  { %v531_v38 = vpop.f32.mrf.mxu1 }
 0x1df   :  { %v307_v39 = vmax.f32 %v302_v37, 0.0 }
 0x1e0   :  { %v304_v40 = vpop.f32.mrf.mxu1 }
 0x1e1   :  { %v308_v41 = vpack.c.bf16 %v307_v39, %v307_v39 }
 0x1e2   :  { %v532_v42 = vpop.f32.mrf.mxu1 }
 0x1e3   :  { %550 = vmatmul.mubr.bf16.vlgmr.msra.gmra.mxu0 %v308_v41 }
 0x2a3   :  { %v414_v44 = vpop.f32.mrf.mxu0 }
 0x2a4   :  { %v415_v45 = vadd.f32 %v457_v43, %v414_v44 }
 0x2a5   :  { %v551_v46 = vpop.f32.mrf.mxu0 }
 0x2a6   :  { %v420_v47 = vmax.f32 %v415_v45, 0.0 }
 0x2a7   :  { %v417_v48 = vpop.f32.mrf.mxu0 }
 0x2a8   :  { %421 = vst [vmem:[#allocation10] sm:$0xff] %v420_v47 }
 0x2a9   :  { %v552_v49 = vpop.f32.mrf.mxu0 }
 0x2aa   :  { %677 = shalt.err (!%p674_p10)
}
 0x2ab   :  { %431 = dma.vmem_to_hbm [thread:$0]  %s429_s25, 128, %s813_s7, [#allocation4]  }
 0x2ac   :  { %692 = dma.done.wait [#allocation4], 128  }
 0x2ad   :  { %693 = vsyncadd [#allocation4], 4294967168 }
 0x2ae   :  { %435 = vsyncpa [#allocation3], 1 }
 0x2af   :  { %436 = vsyncpa [#allocation6], 1 }
 0x2b0   :  { %437 = vsyncpa [#allocation9], 1 }
 0x2b1   :  { %438 = vsyncpa [#allocation4], 1 }

// kernel: tpu_custom_call.1
= control target key start
LH: loop header
LB: loop body
LE: loop exit
PB: predicated region body
PF: predicated region fallthrough
CT: control target
= control target key end

     0   :  { %12 = vsyncpa [#allocation3], 0  ;;  %s806_s0 = inlined_call_operand.hbm [shape: f32[8,128], index: 0, kind: input, shape index: {}]   ;;  %s807_s1 = inlined_call_operand.hbm [shape: bf16[128,128], index: 1, kind: input, shape index: {}]   ;;  %s808_s2 = inlined_call_operand.hbm [shape: bf16[128,128], index: 2, kind: input, shape index: {}]   ;;  %s809_s3 = inlined_call_operand.hbm [shape: bf16[128,128], index: 3, kind: input, shape index: {}]   ;;  %s810_s4 = inlined_call_operand.vmem [shape: f32[1,128], index: 4, kind: input, shape index: {}]   ;;  %s811_s5 = inlined_call_operand.vmem [shape: f32[1,128], index: 5, kind: input, shape index: {}]   ;;  %s812_s6 = inlined_call_operand.vmem [shape: f32[1,128], index: 6, kind: input, shape index: {}]   ;;  %s813_s7 = inlined_call_operand.hbm [shape: f32[8,128], index: 7, kind: output, shape index: {}]  }
   0x1   :  { %13 = vsyncpa [#allocation6], 0 }
   0x2   :  { %14 = vsyncpa [#allocation9], 0 }
   0x3   :  { %15 = vsyncpa [#allocation4], 0  ;;  %s694_s24 = smov [#allocation5]  }
   0x4   :  { %s31_s25 = sshll.u32 %s694_s24, 4  ;;  %s32_s25 = int_to_ptr.vmem [resolvable:$true] %s31_s25 }
   0x5   :  { %s594_s26 = scalar_lea.vmem %s32_s25, 1024  ;;  %p599_p1 = scmp.lt.s32.totalorder %s32_s25, %s32_s25 }
   0x6   :  { %p595_p0 = scmp.ne.s32.totalorder %s32_s25, %s594_s26  ;;  %p600_p2 = scmp.lt.s32.totalorder %s594_s26, %s594_s26 }
   0x8   :  { %p601_p3 = por %p600_p2, %p599_p1 }
   0xa   :  { %p602_p4 = pnand %p601_p3, %p595_p0 }
   0xc   :  { %605 = shalt.err (!%p602_p4)
}
   0xd   :  { %s695_s27 = smov 64   ;;  %s696_s28 = smov 4  }
   0xe   :  { %37 = dma.hbm_to_vmem [thread:$0]  %s807_s1, 1024, %s32_s25, [#allocation6], %s695_s27, %s695_s27, %s696_s28  }
   0xf   :  { %s697_s8 = smov [#allocation2]   ;;  %s698_s10 = smov [#allocation7]  }
  0x10   :  { %s22_s9 = sshll.u32 %s697_s8, 4  ;;  %s43_s11 = sshll.u32 %s698_s10, 4  ;;  %s23_s9 = int_to_ptr.vmem [resolvable:$true] %s22_s9  ;;  %s44_s11 = int_to_ptr.vmem [resolvable:$true] %s43_s11 }
  0x11   :  { %s614_s12 = scalar_lea.vmem %s23_s9, 128  ;;  %p619_p6 = scmp.lt.s32.totalorder %s23_s9, %s23_s9 }
  0x12   :  { %p615_p5 = scmp.ne.s32.totalorder %s23_s9, %s614_s12  ;;  %p620_p7 = scmp.lt.s32.totalorder %s614_s12, %s614_s12 }
  0x14   :  { %p621_p8 = por %p620_p7, %p619_p6 }
  0x16   :  { %p622_p9 = pnand %p621_p8, %p615_p5 }
  0x18   :  { %625 = shalt.err (!%p622_p9)
}
  0x19   :  { %25 = dma.hbm_to_vmem [thread:$0]  %s806_s0, 128, %s23_s9, [#allocation3]  }
  0x1a   :  { %s634_s15 = scalar_lea.vmem %s44_s11, 1024  ;;  %p639_p11 = scmp.lt.s32.totalorder %s44_s11, %s44_s11 }
  0x1b   :  { %p635_p10 = scmp.ne.s32.totalorder %s44_s11, %s634_s15  ;;  %p640_p12 = scmp.lt.s32.totalorder %s634_s15, %s634_s15 }
  0x1d   :  { %p641_p13 = por %p640_p12, %p639_p11 }
  0x1f   :  { %p642_p0 = pnand %p641_p13, %p635_p10 }
  0x21   :  { %645 = shalt.err (!%p642_p0)
}
  0x22   :  { %49 = dma.hbm_to_vmem [thread:$0]  %s808_s2, 1024, %s44_s11, [#allocation6], %s695_s27, %s695_s27, %s696_s28  }
  0x23   :  { %s699_s17 = smov [#allocation8]  }
  0x24   :  { %s55_s18 = sshll.u32 %s699_s17, 4  ;;  %s56_s18 = int_to_ptr.vmem [resolvable:$true] %s55_s18 }
  0x25   :  { %s654_s19 = scalar_lea.vmem %s56_s18, 1024  ;;  %p659_p2 = scmp.lt.s32.totalorder %s56_s18, %s56_s18 }
  0x26   :  { %p655_p1 = scmp.ne.s32.totalorder %s56_s18, %s654_s19  ;;  %p660_p3 = scmp.lt.s32.totalorder %s654_s19, %s654_s19 }
  0x28   :  { %p661_p4 = por %p660_p3, %p659_p2 }
  0x2a   :  { %p662_p5 = pnand %p661_p4, %p655_p1 }
  0x2c   :  { %665 = shalt.err (!%p662_p5)
}
  0x2d   :  { %61 = dma.hbm_to_vmem [thread:$0]  %s809_s3, 1024, %s56_s18, [#allocation9], %s695_s27, %s695_s27, %s696_s28  }
  0x2e   :  { %686 = dma.done.wait [#allocation3], 128  }
  0x2f   :  { %687 = vsyncadd [#allocation3], 4294967168 }
  0x30   :  { %688 = dma.done.wait [#allocation6], 2048  }
  0x31   :  { %689 = vsyncadd [#allocation6], 4294965248 }
  0x32   :  { %690 = dma.done.wait [#allocation9], 1024  }
  0x33   :  { %691 = vsyncadd [#allocation9], 4294966272  ;;  %v700_v0 = vmov 0.0   ;;  %vm701_vm0 = vmmov 0   ;;  %v562_v1 = vld [vmem:[#allocation5 + $0x38] sm:$0xff]   ;;  %v563_v2 = vld [vmem:[#allocation5 + $0x30] sm:$0xff]  }
  0x34   :  { %493 = vmatprep.subr.bf16.mxu0 %v700_v0  ;;  %509 = vmatprep.mubr.msk.bf16.mxu0 %vm701_vm0, %v700_v0  ;;  %v564_v3 = vld [vmem:[#allocation5 + $0x28] sm:$0xff]   ;;  %v570_v4 = vld [vmem:[#allocation7 + $0x38] sm:$0xff]   ;;  %v565_v5 = vld [vmem:[#allocation5 + $0x20] sm:$0xff]   ;;  %s702_s24 = smov [#allocation10]  }
  0x35   :  { %513 = vmatprep.subr.bf16.mxu1 %v700_v0  ;;  %529 = vmatprep.mubr.msk.bf16.mxu1 %vm701_vm0, %v700_v0  ;;  %v571_v6 = vld [vmem:[#allocation7 + $0x30] sm:$0xff]   ;;  %v566_v7 = vld [vmem:[#allocation5 + $0x18] sm:$0xff]   ;;  %v572_v8 = vld [vmem:[#allocation7 + $0x28] sm:$0xff]   ;;  %s428_s25 = sshll.u32 %s702_s24, 4  ;;  %s429_s25 = int_to_ptr.vmem [resolvable:$true] %s428_s25 }
  0x36   :  { %494 = vmatpush3.bf16.msra.mxu0 %v562_v1  ;;  %514 = vmatpush3.bf16.msra.mxu1 %v570_v4  ;;  %v567_v9 = vld [vmem:[#allocation5 + $0x10] sm:$0xff]   ;;  %v573_v10 = vld [vmem:[#allocation7 + $0x20] sm:$0xff]   ;;  %v568_v11 = vld [vmem:[#allocation5 + $0x8] sm:$0xff]   ;;  %p671_p7 = scmp.lt.s32.totalorder %s429_s25, %s429_s25 }
  0x37   :  { %495 = vmatprep.subr.bf16.mxu0 %v700_v0  ;;  %515 = vmatprep.subr.bf16.mxu1 %v700_v0  ;;  %v574_v12 = vld [vmem:[#allocation7 + $0x18] sm:$0xff]   ;;  %v569_v13 = vld [vmem:[#allocation5] sm:$0xff]   ;;  %v575_v15 = vld [vmem:[#allocation7 + $0x10] sm:$0xff]  }
  0x38   :  { %v81_v14 = vld [vmem:[#allocation2] sm:$0xff]  ;;  %v576_v17 = vld [vmem:[#allocation7 + $0x8] sm:$0xff]   ;;  %v577_v18 = vld [vmem:[#allocation7] sm:$0xff]  }
  0x39   :  { %v82_v16 = vpack.c.bf16 %v81_v14, %v81_v14  ;;  %v578_v19 = vld [vmem:[#allocation8 + $0x38] sm:$0xff]   ;;  %v579_v20 = vld [vmem:[#allocation8 + $0x30] sm:$0xff]   ;;  %v580_v21 = vld [vmem:[#allocation8 + $0x28] sm:$0xff]  }
  0x3a   :  { %496 = vmatpush3.bf16.msra.mxu0 %v563_v2  ;;  %516 = vmatpush3.bf16.msra.mxu1 %v571_v6  ;;  %v581_v22 = vld [vmem:[#allocation8 + $0x20] sm:$0xff]   ;;  %v582_v23 = vld [vmem:[#allocation8 + $0x18] sm:$0xff]   ;;  %v583_v24 = vld [vmem:[#allocation8 + $0x10] sm:$0xff]  }
  0x3b   :  { %497 = vmatprep.subr.bf16.mxu0 %v700_v0  ;;  %517 = vmatprep.subr.bf16.mxu1 %v700_v0  ;;  %v439_v25 = vld [vmem:[%s810_s4] ss:$0 sm:$0xff]  ;;  %v584_v33 = vld [vmem:[#allocation8 + $0x8] sm:$0xff]   ;;  %v585_v34 = vld [vmem:[#allocation8] sm:$0xff]  }
  0x3c   :  { %v448_v35 = vld [vmem:[%s811_s5] ss:$0 sm:$0xff]  ;;  %s666_s5 = scalar_lea.vmem %s429_s25, 128 }
  0x3d   :  { %v457_v43 = vld [vmem:[%s812_s6] ss:$0 sm:$0xff]  ;;  %p667_p6 = scmp.ne.s32.totalorder %s429_s25, %s666_s5  ;;  %p672_p8 = scmp.lt.s32.totalorder %s666_s5, %s666_s5 }
  0x3e   :  { %498 = vmatpush3.bf16.msra.mxu0 %v564_v3  ;;  %518 = vmatpush3.bf16.msra.mxu1 %v572_v8 }
  0x3f   :  { %499 = vmatprep.subr.bf16.mxu0 %v700_v0  ;;  %519 = vmatprep.subr.bf16.mxu1 %v700_v0  ;;  %p673_p9 = por %p672_p8, %p671_p7 }
  0x41   :  { %p674_p10 = pnand %p673_p9, %p667_p6 }
  0x42   :  { %500 = vmatpush3.bf16.msra.mxu0 %v565_v5  ;;  %520 = vmatpush3.bf16.msra.mxu1 %v573_v10 }
  0x43   :  { %501 = vmatprep.subr.bf16.mxu0 %v700_v0  ;;  %521 = vmatprep.subr.bf16.mxu1 %v700_v0 }
  0x46   :  { %502 = vmatpush3.bf16.msra.mxu0 %v566_v7  ;;  %522 = vmatpush3.bf16.msra.mxu1 %v574_v12 }
  0x47   :  { %503 = vmatprep.subr.bf16.mxu0 %v700_v0  ;;  %523 = vmatprep.subr.bf16.mxu1 %v700_v0 }
  0x4a   :  { %504 = vmatpush3.bf16.msra.mxu0 %v567_v9  ;;  %524 = vmatpush3.bf16.msra.mxu1 %v575_v15 }
  0x4b   :  { %505 = vmatprep.subr.bf16.mxu0 %v700_v0  ;;  %525 = vmatprep.subr.bf16.mxu1 %v700_v0 }
  0x4e   :  { %506 = vmatpush3.bf16.msra.mxu0 %v568_v11  ;;  %526 = vmatpush3.bf16.msra.mxu1 %v576_v17 }
  0x4f   :  { %507 = vmatprep.subr.bf16.mxu0 %v700_v0  ;;  %527 = vmatprep.subr.bf16.mxu1 %v700_v0 }
  0x52   :  { %508 = vmatpush3.bf16.msra.mxu0 %v569_v13  ;;  %528 = vmatpush3.bf16.msra.mxu1 %v577_v18 }
  0x53   :  { %533 = vmatprep.subr.bf16.mxu0 %v700_v0 }
  0x55   :  { %510 = vmatmul.mubr.bf16.vlgmr.msra.gmra.mxu0 %v82_v16 }
  0x56   :  { %549 = vmatprep.mubr.msk.bf16.mxu0 %vm701_vm0, %v700_v0  ;;  %534 = vmatpush3.bf16.msra.mxu0 %v578_v19 }
  0x57   :  { %535 = vmatprep.subr.bf16.mxu0 %v700_v0 }
  0x5a   :  { %536 = vmatpush3.bf16.msra.mxu0 %v579_v20 }
  0x5b   :  { %537 = vmatprep.subr.bf16.mxu0 %v700_v0 }
  0x5e   :  { %538 = vmatpush3.bf16.msra.mxu0 %v580_v21 }
  0x5f   :  { %539 = vmatprep.subr.bf16.mxu0 %v700_v0 }
  0x62   :  { %540 = vmatpush3.bf16.msra.mxu0 %v581_v22 }
  0x63   :  { %541 = vmatprep.subr.bf16.mxu0 %v700_v0 }
  0x66   :  { %542 = vmatpush3.bf16.msra.mxu0 %v582_v23 }
  0x67   :  { %543 = vmatprep.subr.bf16.mxu0 %v700_v0 }
  0x6a   :  { %544 = vmatpush3.bf16.msra.mxu0 %v583_v24 }
  0x6b   :  { %545 = vmatprep.subr.bf16.mxu0 %v700_v0 }
  0x6e   :  { %546 = vmatpush3.bf16.msra.mxu0 %v584_v33 }
  0x6f   :  { %547 = vmatprep.subr.bf16.mxu0 %v700_v0 }
  0x72   :  { %548 = vmatpush3.bf16.msra.mxu0 %v585_v34 }
 0x115   :  { %v188_v26 = vpop.f32.mrf.mxu0 }
 0x116   :  { %v189_v27 = vadd.f32 %v439_v25, %v188_v26 }
 0x117   :  { %v511_v28 = vpop.f32.mrf.mxu0 }
 0x118   :  { %v194_v29 = vmax.f32 %v189_v27, 0.0 }
 0x119   :  { %v191_v30 = vpop.f32.mrf.mxu0 }
 0x11a   :  { %v195_v31 = vpack.c.bf16 %v194_v29, %v194_v29 }
 0x11b   :  { %v512_v32 = vpop.f32.mrf.mxu0 }
 0x11c   :  { %530 = vmatmul.mubr.bf16.vlgmr.msra.gmra.mxu1 %v195_v31 }
 0x1dc   :  { %v301_v36 = vpop.f32.mrf.mxu1 }
 0x1dd   :  { %v302_v37 = vadd.f32 %v448_v35, %v301_v36 }
 0x1de   :  { %v531_v38 = vpop.f32.mrf.mxu1 }
 0x1df   :  { %v307_v39 = vmax.f32 %v302_v37, 0.0 }
 0x1e0   :  { %v304_v40 = vpop.f32.mrf.mxu1 }
 0x1e1   :  { %v308_v41 = vpack.c.bf16 %v307_v39, %v307_v39 }
 0x1e2   :  { %v532_v42 = vpop.f32.mrf.mxu1 }
 0x1e3   :  { %550 = vmatmul.mubr.bf16.vlgmr.msra.gmra.mxu0 %v308_v41 }
 0x2a3   :  { %v414_v44 = vpop.f32.mrf.mxu0 }
 0x2a4   :  { %v415_v45 = vadd.f32 %v457_v43, %v414_v44 }
 0x2a5   :  { %v551_v46 = vpop.f32.mrf.mxu0 }
 0x2a6   :  { %v420_v47 = vmax.f32 %v415_v45, 0.0 }
 0x2a7   :  { %v417_v48 = vpop.f32.mrf.mxu0 }
 0x2a8   :  { %421 = vst [vmem:[#allocation10] sm:$0xff] %v420_v47 }
 0x2a9   :  { %v552_v49 = vpop.f32.mrf.mxu0 }
 0x2aa   :  { %677 = shalt.err (!%p674_p10)
}
 0x2ab   :  { %431 = dma.vmem_to_hbm [thread:$0]  %s429_s25, 128, %s813_s7, [#allocation4]  }
 0x2ac   :  { %692 = dma.done.wait [#allocation4], 128  }
 0x2ad   :  { %693 = vsyncadd [#allocation4], 4294967168 }
 0x2ae   :  { %435 = vsyncpa [#allocation3], 1 }
 0x2af   :  { %436 = vsyncpa [#allocation6], 1 }
 0x2b0   :  { %437 = vsyncpa [#allocation9], 1 }
 0x2b1   :  { %438 = vsyncpa [#allocation4], 1 }

</bundles_post_ra>
